<compile_context>
chip_gen: v5e
topology: v5e:2x2
jax: 0.10.0
libtpu: 0.0.40
codegen_flags: <defaults>
</compile_context>

<pallas_src>
import math
import numpy as np
import jax
import jax.numpy as jnp
from jax import lax
from jax.experimental import pallas as pl
from jax.experimental.pallas import tpu as pltpu

# ---------------- model config (small, consistent with the module) ----------------
D_MODEL = 64
N_HEADS = 4
HEAD_DIM = D_MODEL // N_HEADS          # 16
HALF = HEAD_DIM // 2                   # 8
WIDTH = 4 * D_MODEL                    # 256 = [Q(64) | K(64) | V(64) | pad(64)], lane aligned
MAX_LEN = 1024
ROPE_THETA = 1000.0
INIT_SCALE = 0.02

BATCH = 2
SEQ = 16


# ---------------------------------- Pallas kernel ----------------------------------
def _rope_mha_kernel(x_ref, wqkv_ref, wo_ref, cos_ref, sinl_ref, sinr_ref, o_ref):
    # One batch element per grid step: x is (S, 64) bf16.
    x = x_ref[...]

    # --- single fused QKV projection: (S,64) @ (64,256) -> (S,256) f32 ---
    qkv = jnp.dot(x, wqkv_ref[...], preferred_element_type=jnp.float32)

    # --- single RoPE pass on the fused slab (f32) ---
    # Q/K columns are per-head [even(8) | odd(8)] blocks (weight rows pre-permuted):
    #   even col c : e*cos - o*sin   (partner at c+HALF)
    #   odd  col c : o*cos + e*sin   (partner at c-HALF)
    # sin_l / sin_r are zero outside the half they apply to (and zero on V / pad),
    # so the lane rotations never leak across head / region boundaries.
    cos = cos_ref[...]
    sin_l = sinl_ref[...]
    sin_r = sinr_ref[...]
    left = pltpu.roll(qkv, shift=WIDTH - HALF, axis=1)   # left[:, c]  = qkv[:, c + HALF]
    right = pltpu.roll(qkv, shift=HALF, axis=1)          # right[:, c] = qkv[:, c - HALF]
    qkv = qkv * cos + left * sin_l + right * sin_r

    qkv_b = qkv.astype(jnp.bfloat16)

    # --- gather heads into (H, S, hd) with the head dim LEADING so the attention
    #     einsums are standard leading-batch 3-D dot_generals ---
    def heads(base):
        return jnp.stack(
            [qkv_b[:, base + h * HEAD_DIM: base + (h + 1) * HEAD_DIM]
             for h in range(N_HEADS)],
            axis=0)

    qh = heads(0)                 # scale already folded into the Q weights
    kh = heads(D_MODEL)
    vh = heads(2 * D_MODEL)

    # --- one batched score matmul for all heads ---
    s = jnp.einsum("hqd,hkd->hqk", qh, kh,
                   preferred_element_type=jnp.float32)            # (H, S, S) f32

    # --- causal mask generated in-kernel (additive 0 / -1e30) ---
    S_ = s.shape[-1]
    row = lax.broadcasted_iota(jnp.int32, (S_, S_), 0)
    col = lax.broadcasted_iota(jnp.int32, (S_, S_), 1)
    s = s + jnp.where(col > row, jnp.float32(-1e30), jnp.float32(0.0))[None]

    # --- one softmax (f32), EUP reciprocal ---
    s = s - jnp.max(s, axis=-1, keepdims=True)
    p = jnp.exp(s)
    p = p * pl.reciprocal(jnp.sum(p, axis=-1, keepdims=True), approx=True)
    # TODO(synk): attention dropout omitted (eval-mode semantics => identity).

    # --- one batched attn @ V matmul for all heads ---
    ctx = jnp.einsum("hqk,hkd->hqd", p.astype(jnp.bfloat16), vh,
                     preferred_element_type=jnp.float32)          # (H, S, hd) f32

    # --- back to row-major (S, 64) via one lane concat, then single output proj ---
    ctx_b = ctx.astype(jnp.bfloat16)
    ctx_rm = jnp.concatenate([ctx_b[h] for h in range(N_HEADS)], axis=-1)   # (S, 64)
    o_ref[...] = jnp.dot(ctx_rm, wo_ref[...], preferred_element_type=jnp.float32)


# ---------------------------------- wrapper (glue) ----------------------------------
def _even_odd_perm():
    """Per-head row permutation so projected features land as [even(8) | odd(8)]."""
    idx = np.arange(D_MODEL).reshape(N_HEADS, HEAD_DIM)
    return np.concatenate([idx[:, 0::2], idx[:, 1::2]], axis=1).reshape(-1)


def rope_mha_forward(x, wq, wk, wv, wo, cos_cached, sin_cached):
    B, S, D = x.shape
    perm = _even_odd_perm()
    scale = 1.0 / math.sqrt(HEAD_DIM)

    # --- fused, pre-permuted, pre-transposed QKV weight (host-side, free) ---
    wq_t = (scale * wq[perm]).T                 # 1/sqrt(hd) folded into Q weights
    wk_t = wk[perm].T
    wv_t = wv.T                                 # V not permuted (matches wo layout)
    pad = jnp.zeros((D, D), jnp.float32)
    wqkv_t = jnp.concatenate([wq_t, wk_t, wv_t, pad], axis=1).astype(jnp.bfloat16)  # (64, 256)
    wo_t = wo.T.astype(jnp.bfloat16)

    # --- 256-wide RoPE tables (f32): Q/K heads get cos / signed-sin, V cos=1, pad 0 ---
    cos = cos_cached[:S]                        # (S, HALF), past_length = 0
    sin = sin_cached[:S]
    zeros_h = jnp.zeros_like(sin)
    cos_head = jnp.concatenate([cos, cos], axis=1)               # (S, HEAD_DIM)
    sinl_head = jnp.concatenate([-sin, zeros_h], axis=1)         # coeff of t[:, c+HALF]
    sinr_head = jnp.concatenate([zeros_h, sin], axis=1)          # coeff of t[:, c-HALF]

    cos_qk = jnp.tile(cos_head, (1, N_HEADS))                    # (S, 64)
    sinl_qk = jnp.tile(sinl_head, (1, N_HEADS))
    sinr_qk = jnp.tile(sinr_head, (1, N_HEADS))
    ones_v = jnp.ones((S, D), jnp.float32)
    zeros_v = jnp.zeros((S, D), jnp.float32)

    cos_full = jnp.concatenate([cos_qk, cos_qk, ones_v, zeros_v], axis=1)    # (S, 256)
    sinl_full = jnp.concatenate([sinl_qk, sinl_qk, zeros_v, zeros_v], axis=1)
    sinr_full = jnp.concatenate([sinr_qk, sinr_qk, zeros_v, zeros_v], axis=1)

    x2 = x.reshape(B * S, D).astype(jnp.bfloat16)

    out2 = pl.pallas_call(
        _rope_mha_kernel,
        out_shape=jax.ShapeDtypeStruct((B * S, D), jnp.float32),
        grid=(B,),                                  # one sequence per step; parallel for v7x's 2 TCs
        in_specs=[
            pl.BlockSpec((S, D), lambda b: (b, 0)),          # x (bf16)
            pl.BlockSpec((D, WIDTH), lambda b: (0, 0)),      # fused QKV weight (bf16)
            pl.BlockSpec((D, D), lambda b: (0, 0)),          # wo^T (bf16)
            pl.BlockSpec((S, WIDTH), lambda b: (0, 0)),      # cos
            pl.BlockSpec((S, WIDTH), lambda b: (0, 0)),      # sin_l
            pl.BlockSpec((S, WIDTH), lambda b: (0, 0)),      # sin_r
        ],
        out_specs=pl.BlockSpec((S, D), lambda b: (b, 0)),
        compiler_params=pltpu.CompilerParams(dimension_semantics=("parallel",)),
    )(x2, wqkv_t, wo_t, cos_full, sinl_full, sinr_full)

    return out2.reshape(B, S, D)
    # TODO(synk): kv_cache / use_cache incremental-decode path and the
    # last_attn_pattern side buffer of the PyTorch module are not implemented.


# ------------------------------ pure-JAX reference ------------------------------
def rope_mha_reference(x, wq, wk, wv, wo, cos_cached, sin_cached):
    B, S, D = x.shape
    hp = jax.lax.Precision.HIGHEST
    q = jnp.einsum("bsd,ed->bse", x, wq, precision=hp)
    k = jnp.einsum("bsd,ed->bse", x, wk, precision=hp)
    v = jnp.einsum("bsd,ed->bse", x, wv, precision=hp)
    q = q.reshape(B, S, N_HEADS, HEAD_DIM).transpose(0, 2, 1, 3)
    k = k.reshape(B, S, N_HEADS, HEAD_DIM).transpose(0, 2, 1, 3)
    v = v.reshape(B, S, N_HEADS, HEAD_DIM).transpose(0, 2, 1, 3)

    def apply_rope(t):
        e = t[..., 0::2]
        o = t[..., 1::2]
        c = cos_cached[:S][None, None]              # (1, 1, S, HALF)
        s = sin_cached[:S][None, None]
        return jnp.concatenate([e * c - o * s, o * c + e * s], axis=-1)

    q = apply_rope(q)
    k = apply_rope(k)
    attn = jnp.einsum("bhqd,bhkd->bhqk", q, k, precision=hp) / math.sqrt(HEAD_DIM)
    mask = jnp.triu(jnp.ones((S, S), dtype=bool), k=1)
    attn = jnp.where(mask[None, None], -jnp.inf, attn)
    w = jax.nn.softmax(attn, axis=-1)
    out = jnp.einsum("bhqk,bhkd->bhqd", w, v, precision=hp)
    out = out.transpose(0, 2, 1, 3).reshape(B, S, D)
    return jnp.einsum("bsd,ed->bse", out, wo, precision=hp)


# --------------------------------------- main ---------------------------------------
if __name__ == "__main__":
    key = jax.random.PRNGKey(0)
    kx, kq, kk, kv, ko = jax.random.split(key, 5)

    x = jax.random.normal(kx, (BATCH, SEQ, D_MODEL), dtype=jnp.float32)
    wq = INIT_SCALE * jax.random.normal(kq, (D_MODEL, D_MODEL), dtype=jnp.float32)
    wk = INIT_SCALE * jax.random.normal(kk, (D_MODEL, D_MODEL), dtype=jnp.float32)
    wv = INIT_SCALE * jax.random.normal(kv, (D_MODEL, D_MODEL), dtype=jnp.float32)
    wo = INIT_SCALE * jax.random.normal(ko, (D_MODEL, D_MODEL), dtype=jnp.float32)

    # RoPE caches (same construction as the PyTorch module)
    freqs = 1.0 / (ROPE_THETA ** (np.arange(0, HEAD_DIM, 2, dtype=np.float32) / HEAD_DIM))
    emb = np.outer(np.arange(MAX_LEN, dtype=np.float32), freqs)
    cos_cached = jnp.asarray(np.cos(emb), dtype=jnp.float32)   # (MAX_LEN, HALF)
    sin_cached = jnp.asarray(np.sin(emb), dtype=jnp.float32)

    out = rope_mha_forward(x, wq, wk, wv, wo, cos_cached, sin_cached)
    out = jax.block_until_ready(out)

    ref = jax.block_until_ready(rope_mha_reference(x, wq, wk, wv, wo, cos_cached, sin_cached))
    assert out.shape == (BATCH, SEQ, D_MODEL)
    np.testing.assert_allclose(np.asarray(out), np.asarray(ref), rtol=1e-2, atol=1e-3)

    print("KERNEL_OK")
</pallas_src>

<mosaic_0001>
module attributes {stable_mosaic.version = 11 : i64} {
  func.func @_rope_mha_kernel(%arg0: i32, %arg1: memref<16x64xbf16, #tpu.memory_space<vmem>>, %arg2: memref<64x256xbf16, #tpu.memory_space<vmem>>, %arg3: memref<64x64xbf16, #tpu.memory_space<vmem>>, %arg4: memref<16x256xf32, #tpu.memory_space<vmem>>, %arg5: memref<16x256xf32, #tpu.memory_space<vmem>>, %arg6: memref<16x256xf32, #tpu.memory_space<vmem>>, %arg7: memref<16x64xf32, #tpu.memory_space<vmem>>) attributes {dimension_semantics = [#tpu.dimension_semantics<parallel>], iteration_bounds = array<i64: 2>, scalar_prefetch = 0 : i64, scratch_operands = 0 : i64, tpu.core_type = #tpu.core_type<tc>, window_params = [{transform_indices = @transform_0, window_bounds = array<i64: 16, 64>}, {pipeline_mode = #tpu.pipeline_mode<synchronous>, transform_indices = @transform_1, window_bounds = array<i64: 64, 256>}, {pipeline_mode = #tpu.pipeline_mode<synchronous>, transform_indices = @transform_2, window_bounds = array<i64: 64, 64>}, {pipeline_mode = #tpu.pipeline_mode<synchronous>, transform_indices = @transform_3, window_bounds = array<i64: 16, 256>}, {pipeline_mode = #tpu.pipeline_mode<synchronous>, transform_indices = @transform_4, window_bounds = array<i64: 16, 256>}, {pipeline_mode = #tpu.pipeline_mode<synchronous>, transform_indices = @transform_5, window_bounds = array<i64: 16, 256>}, {transform_indices = @transform_6, window_bounds = array<i64: 16, 64>}]} {
    %c0 = arith.constant 0 : index
    %c0_0 = arith.constant 0 : index
    %0 = vector.load %arg1[%c0, %c0_0] : memref<16x64xbf16, #tpu.memory_space<vmem>>, vector<16x64xbf16>
    %c0_1 = arith.constant 0 : index
    %c0_2 = arith.constant 0 : index
    %1 = vector.load %arg2[%c0_1, %c0_2] : memref<64x256xbf16, #tpu.memory_space<vmem>>, vector<64x256xbf16>
    %cst = arith.constant dense<0.000000e+00> : vector<16x256xf32>
    %2 = tpu.matmul %0, %1, %cst {dimension_numbers = #tpu.dot_dimension_numbers<[1], [0], [0], [1], [0, 0, 1, 1], [], []>} : vector<16x64xbf16>, vector<64x256xbf16>, vector<16x256xf32> -> vector<16x256xf32>
    %c0_3 = arith.constant 0 : index
    %c0_4 = arith.constant 0 : index
    %3 = vector.load %arg4[%c0_3, %c0_4] : memref<16x256xf32, #tpu.memory_space<vmem>>, vector<16x256xf32>
    %c0_5 = arith.constant 0 : index
    %c0_6 = arith.constant 0 : index
    %4 = vector.load %arg5[%c0_5, %c0_6] : memref<16x256xf32, #tpu.memory_space<vmem>>, vector<16x256xf32>
    %c0_7 = arith.constant 0 : index
    %c0_8 = arith.constant 0 : index
    %5 = vector.load %arg6[%c0_7, %c0_8] : memref<16x256xf32, #tpu.memory_space<vmem>>, vector<16x256xf32>
    %c248_i32 = arith.constant 248 : i32
    %6 = tpu.dynamic_rotate %2 by %c248_i32 dim 1 : vector<16x256xf32>, i32 -> vector<16x256xf32>
    %c8_i32 = arith.constant 8 : i32
    %7 = tpu.dynamic_rotate %2 by %c8_i32 dim 1 : vector<16x256xf32>, i32 -> vector<16x256xf32>
    %8 = arith.mulf %2, %3 : vector<16x256xf32>
    %9 = arith.mulf %6, %4 : vector<16x256xf32>
    %10 = arith.addf %8, %9 : vector<16x256xf32>
    %11 = arith.mulf %7, %5 : vector<16x256xf32>
    %12 = arith.addf %10, %11 : vector<16x256xf32>
    %13 = arith.truncf %12 : vector<16x256xf32> to vector<16x256xbf16>
    %14 = vector.extract_strided_slice %13 {offsets = [0, 0], sizes = [16, 16], strides = [1, 1]} : vector<16x256xbf16> to vector<16x16xbf16>
    %15 = vector.extract_strided_slice %13 {offsets = [0, 16], sizes = [16, 16], strides = [1, 1]} : vector<16x256xbf16> to vector<16x16xbf16>
    %16 = vector.extract_strided_slice %13 {offsets = [0, 32], sizes = [16, 16], strides = [1, 1]} : vector<16x256xbf16> to vector<16x16xbf16>
    %17 = vector.extract_strided_slice %13 {offsets = [0, 48], sizes = [16, 16], strides = [1, 1]} : vector<16x256xbf16> to vector<16x16xbf16>
    %18 = vector.shape_cast %14 : vector<16x16xbf16> to vector<1x16x16xbf16>
    %19 = vector.shape_cast %15 : vector<16x16xbf16> to vector<1x16x16xbf16>
    %20 = vector.shape_cast %16 : vector<16x16xbf16> to vector<1x16x16xbf16>
    %21 = vector.shape_cast %17 : vector<16x16xbf16> to vector<1x16x16xbf16>
    %22 = tpu.concatenate %18, %19, %20, %21 in 0 : vector<1x16x16xbf16>, vector<1x16x16xbf16>, vector<1x16x16xbf16>, vector<1x16x16xbf16> -> vector<4x16x16xbf16>
    %23 = vector.extract_strided_slice %13 {offsets = [0, 64], sizes = [16, 16], strides = [1, 1]} : vector<16x256xbf16> to vector<16x16xbf16>
    %24 = vector.extract_strided_slice %13 {offsets = [0, 80], sizes = [16, 16], strides = [1, 1]} : vector<16x256xbf16> to vector<16x16xbf16>
    %25 = vector.extract_strided_slice %13 {offsets = [0, 96], sizes = [16, 16], strides = [1, 1]} : vector<16x256xbf16> to vector<16x16xbf16>
    %26 = vector.extract_strided_slice %13 {offsets = [0, 112], sizes = [16, 16], strides = [1, 1]} : vector<16x256xbf16> to vector<16x16xbf16>
    %27 = vector.shape_cast %23 : vector<16x16xbf16> to vector<1x16x16xbf16>
    %28 = vector.shape_cast %24 : vector<16x16xbf16> to vector<1x16x16xbf16>
    %29 = vector.shape_cast %25 : vector<16x16xbf16> to vector<1x16x16xbf16>
    %30 = vector.shape_cast %26 : vector<16x16xbf16> to vector<1x16x16xbf16>
    %31 = tpu.concatenate %27, %28, %29, %30 in 0 : vector<1x16x16xbf16>, vector<1x16x16xbf16>, vector<1x16x16xbf16>, vector<1x16x16xbf16> -> vector<4x16x16xbf16>
    %32 = vector.extract_strided_slice %13 {offsets = [0, 128], sizes = [16, 16], strides = [1, 1]} : vector<16x256xbf16> to vector<16x16xbf16>
    %33 = vector.extract_strided_slice %13 {offsets = [0, 144], sizes = [16, 16], strides = [1, 1]} : vector<16x256xbf16> to vector<16x16xbf16>
    %34 = vector.extract_strided_slice %13 {offsets = [0, 160], sizes = [16, 16], strides = [1, 1]} : vector<16x256xbf16> to vector<16x16xbf16>
    %35 = vector.extract_strided_slice %13 {offsets = [0, 176], sizes = [16, 16], strides = [1, 1]} : vector<16x256xbf16> to vector<16x16xbf16>
    %36 = vector.shape_cast %32 : vector<16x16xbf16> to vector<1x16x16xbf16>
    %37 = vector.shape_cast %33 : vector<16x16xbf16> to vector<1x16x16xbf16>
    %38 = vector.shape_cast %34 : vector<16x16xbf16> to vector<1x16x16xbf16>
    %39 = vector.shape_cast %35 : vector<16x16xbf16> to vector<1x16x16xbf16>
    %40 = tpu.concatenate %36, %37, %38, %39 in 0 : vector<1x16x16xbf16>, vector<1x16x16xbf16>, vector<1x16x16xbf16>, vector<1x16x16xbf16> -> vector<4x16x16xbf16>
    "tpu.trace_start"() <{level = 10 : i32, message = "hqd,hkd->hqk"}> : () -> ()
    %cst_9 = arith.constant dense<0.000000e+00> : vector<4x16x16xf32>
    %41 = tpu.matmul %22, %31, %cst_9 {dimension_numbers = #tpu.dot_dimension_numbers<[2], [2], [1], [1], [0, 0, 0, 1, 1, 1], [0], [0]>} : vector<4x16x16xbf16>, vector<4x16x16xbf16>, vector<4x16x16xf32> -> vector<4x16x16xf32>
    "tpu.trace_stop"() : () -> ()
    %42 = tpu.iota {dimensions = array<i32: 0>} : vector<16x16xi32>
    %43 = tpu.iota {dimensions = array<i32: 1>} : vector<16x16xi32>
    %44 = arith.cmpi sgt, %43, %42 : vector<16x16xi32>
    %cst_10 = arith.constant -1.000000e+30 : f32
    %cst_11 = arith.constant 0.000000e+00 : f32
    %45 = vector.broadcast %cst_10 : f32 to vector<16x16xf32>
    %46 = vector.broadcast %cst_11 : f32 to vector<16x16xf32>
    %47 = arith.select %44, %45, %46 : vector<16x16xi1>, vector<16x16xf32>
    %48 = vector.shape_cast %47 : vector<16x16xf32> to vector<1x16x16xf32>
    %49 = vector.broadcast %48 : vector<1x16x16xf32> to vector<4x16x16xf32>
    %50 = arith.addf %41, %49 : vector<4x16x16xf32>
    %cst_12 = arith.constant dense<0xFF800000> : vector<4x16xf32>
    %51 = vector.multi_reduction <maximumf>, %50, %cst_12 [2] : vector<4x16x16xf32> to vector<4x16xf32>
    %52 = vector.shape_cast %51 : vector<4x16xf32> to vector<4x16x1xf32>
    %53 = vector.broadcast %52 : vector<4x16x1xf32> to vector<4x16x16xf32>
    %54 = arith.subf %50, %53 : vector<4x16x16xf32>
    %55 = math.exp %54 : vector<4x16x16xf32>
    %cst_13 = arith.constant dense<0.000000e+00> : vector<4x16xf32>
    %56 = vector.multi_reduction <add>, %55, %cst_13 [2] : vector<4x16x16xf32> to vector<4x16xf32>
    %57 = vector.shape_cast %56 : vector<4x16xf32> to vector<4x16x1xf32>
    %58 = tpu.reciprocal %57 {approx = true} : vector<4x16x1xf32> -> vector<4x16x1xf32>
    %59 = vector.broadcast %58 : vector<4x16x1xf32> to vector<4x16x16xf32>
    %60 = arith.mulf %55, %59 : vector<4x16x16xf32>
    %61 = arith.truncf %60 : vector<4x16x16xf32> to vector<4x16x16xbf16>
    "tpu.trace_start"() <{level = 10 : i32, message = "hqk,hkd->hqd"}> : () -> ()
    %cst_14 = arith.constant dense<0.000000e+00> : vector<4x16x16xf32>
    %62 = tpu.matmul %61, %40, %cst_14 {dimension_numbers = #tpu.dot_dimension_numbers<[2], [1], [1], [2], [0, 0, 0, 1, 1, 2], [0], [0]>} : vector<4x16x16xbf16>, vector<4x16x16xbf16>, vector<4x16x16xf32> -> vector<4x16x16xf32>
    "tpu.trace_stop"() : () -> ()
    %63 = arith.truncf %62 : vector<4x16x16xf32> to vector<4x16x16xbf16>
    %64 = vector.extract_strided_slice %63 {offsets = [0, 0, 0], sizes = [1, 16, 16], strides = [1, 1, 1]} : vector<4x16x16xbf16> to vector<1x16x16xbf16>
    %65 = vector.shape_cast %64 : vector<1x16x16xbf16> to vector<16x16xbf16>
    %66 = vector.extract_strided_slice %63 {offsets = [1, 0, 0], sizes = [1, 16, 16], strides = [1, 1, 1]} : vector<4x16x16xbf16> to vector<1x16x16xbf16>
    %67 = vector.shape_cast %66 : vector<1x16x16xbf16> to vector<16x16xbf16>
    %68 = vector.extract_strided_slice %63 {offsets = [2, 0, 0], sizes = [1, 16, 16], strides = [1, 1, 1]} : vector<4x16x16xbf16> to vector<1x16x16xbf16>
    %69 = vector.shape_cast %68 : vector<1x16x16xbf16> to vector<16x16xbf16>
    %70 = vector.extract_strided_slice %63 {offsets = [3, 0, 0], sizes = [1, 16, 16], strides = [1, 1, 1]} : vector<4x16x16xbf16> to vector<1x16x16xbf16>
    %71 = vector.shape_cast %70 : vector<1x16x16xbf16> to vector<16x16xbf16>
    %72 = tpu.concatenate %65, %67, %69, %71 in 1 : vector<16x16xbf16>, vector<16x16xbf16>, vector<16x16xbf16>, vector<16x16xbf16> -> vector<16x64xbf16>
    %c0_15 = arith.constant 0 : index
    %c0_16 = arith.constant 0 : index
    %73 = vector.load %arg3[%c0_15, %c0_16] : memref<64x64xbf16, #tpu.memory_space<vmem>>, vector<64x64xbf16>
    %cst_17 = arith.constant dense<0.000000e+00> : vector<16x64xf32>
    %74 = tpu.matmul %72, %73, %cst_17 {dimension_numbers = #tpu.dot_dimension_numbers<[1], [0], [0], [1], [0, 0, 1, 1], [], []>} : vector<16x64xbf16>, vector<64x64xbf16>, vector<16x64xf32> -> vector<16x64xf32>
    %c0_18 = arith.constant 0 : index
    %c0_19 = arith.constant 0 : index
    %75 = vector.load %arg7[%c0_18, %c0_19] : memref<16x64xf32, #tpu.memory_space<vmem>>, vector<16x64xf32>
    tpu.vector_store %arg7[%c0_18, %c0_19], %74 {strides = array<i32>} : memref<16x64xf32, #tpu.memory_space<vmem>>, vector<16x64xf32>,
    return
  }
  func.func @transform_0(%arg0: i32) -> (i32, i32) {
    %c0_i32 = arith.constant 0 : i32
    %c0_i32_0 = arith.constant 0 : i32
    return %arg0, %c0_i32 : i32, i32
  }
  func.func @transform_1(%arg0: i32) -> (i32, i32) {
    %c0_i32 = arith.constant 0 : i32
    %c0_i32_0 = arith.constant 0 : i32
    %c0_i32_1 = arith.constant 0 : i32
    return %c0_i32, %c0_i32_0 : i32, i32
  }
  func.func @transform_2(%arg0: i32) -> (i32, i32) {
    %c0_i32 = arith.constant 0 : i32
    %c0_i32_0 = arith.constant 0 : i32
    %c0_i32_1 = arith.constant 0 : i32
    return %c0_i32, %c0_i32_0 : i32, i32
  }
  func.func @transform_3(%arg0: i32) -> (i32, i32) {
    %c0_i32 = arith.constant 0 : i32
    %c0_i32_0 = arith.constant 0 : i32
    %c0_i32_1 = arith.constant 0 : i32
    return %c0_i32, %c0_i32_0 : i32, i32
  }
  func.func @transform_4(%arg0: i32) -> (i32, i32) {
    %c0_i32 = arith.constant 0 : i32
    %c0_i32_0 = arith.constant 0 : i32
    %c0_i32_1 = arith.constant 0 : i32
    return %c0_i32, %c0_i32_0 : i32, i32
  }
  func.func @transform_5(%arg0: i32) -> (i32, i32) {
    %c0_i32 = arith.constant 0 : i32
    %c0_i32_0 = arith.constant 0 : i32
    %c0_i32_1 = arith.constant 0 : i32
    return %c0_i32, %c0_i32_0 : i32, i32
  }
  func.func @transform_6(%arg0: i32) -> (i32, i32) {
    %c0_i32 = arith.constant 0 : i32
    %c0_i32_0 = arith.constant 0 : i32
    return %arg0, %c0_i32 : i32, i32
  }
}

</mosaic_0001>

<bundles_post_ra>
// kernel: tpu_custom_call.1
= control target key start
LH: loop header
LB: loop body
LE: loop exit
PB: predicated region body
PF: predicated region fallthrough
CT: control target
= control target key end

     0   :  { %11 = vsyncpa [#allocation3], 0  ;;  %s1871_s0 = inlined_call_operand.hbm [shape: bf16[32,64], index: 0, kind: input, shape index: {}]   ;;  %s1872_s1 = inlined_call_operand.hbm [shape: bf16[64,256], index: 1, kind: input, shape index: {}]   ;;  %s1873_s2 = inlined_call_operand.hbm [shape: bf16[64,64], index: 2, kind: input, shape index: {}]   ;;  %s1874_s3 = inlined_call_operand.hbm [shape: f32[16,256], index: 3, kind: input, shape index: {}]   ;;  %s1875_s4 = inlined_call_operand.hbm [shape: f32[16,256], index: 4, kind: input, shape index: {}]   ;;  %s1876_s5 = inlined_call_operand.hbm [shape: f32[16,256], index: 5, kind: input, shape index: {}]   ;;  %s1877_s6 = inlined_call_operand.hbm [shape: f32[32,64], index: 6, kind: output, shape index: {}]  }
   0x1   :  { %13 = vsyncpa [#allocation3 + $0x1], 0 }
   0x2   :  { %14 = vsyncpa [#allocation6], 0 }
   0x3   :  { %15 = vsyncpa [#allocation9], 0 }
   0x4   :  { %16 = vsyncpa [#allocation12], 0 }
   0x5   :  { %17 = vsyncpa [#allocation4], 0 }
   0x6   :  { %19 = vsyncpa [#allocation4 + $0x1], 0  ;;  %s1632_s21 = smov 0   ;;  %s1634_s22 = smov 0  }
   0x7   :  { %s1636_s23 = smov 0   ;;  %s1638_s24 = smov 0  }
   0x8 LB: > { %s198_s27 = sshll.u32 %s1872_s1, 4  ;;  %s1656_s28 = sadd.s32 4294967295, %s1573_s24   ;;  %s1573_s24 = sphi %s1638_s24, %s1892_s24   ;;  %s1569_s23 = sphi %s1636_s23, %s1891_s23   ;;  %s1565_s22 = sphi %s1634_s22, %s1890_s22   ;;  %s1561_s21 = sphi %s1632_s21, %s1889_s21   ;;  %s199_s27 = int_to_ptr.hbm [resolvable:$true] %s198_s27 }
   0x9   : > { %p1068_p0 = scmp.ge.s32.totalorder %s1573_s24, 1  ;;  %p46_p1 = scmp.eq.s32.totalorder %s1656_s28, 0 }
   0xa   : > { %p187_p2 = scmp.lt.s32.totalorder %s1573_s24, 3  ;;  %s1575_s30 = smov [#allocation5]  }
   0xb   : > { %s200_s7 = sshll.u32 %s1575_s30, 4  ;;  %s226_s10 = sshll.u32 %s1874_s3, 4  ;;  %s201_s7 = int_to_ptr.vmem [resolvable:$true] %s200_s7  ;;  %s227_s10 = int_to_ptr.hbm [resolvable:$true] %s226_s10 }
   0xc   : > { %p1661_p3 = pnand %p1068_p0, %p187_p2  ;;  %s1576_s12 = smov [#allocation8]  }
   0xd   : > { %s228_s13 = sshll.u32 %s1576_s12, 4  ;;  %s1577_s14 = smov 128   ;;  %s229_s13 = int_to_ptr.vmem [resolvable:$true] %s228_s13 }
   0xe   : > { %p1193_p4 = pneg %p1661_p3  ;;  %s1578_s15 = smov 8  }
   0xf   : > { %s1579_s16 = smov 256   ;;  %s1580_s17 = smov 16  }
  0x10   : > { %p1673_p6 = pnand %p1193_p4, %p46_p1  ;;  %s212_s20 = sshll.u32 %s1873_s2, 4  ;;  %s213_s20 = int_to_ptr.hbm [resolvable:$true] %s212_s20 }
  0x11   : > { %s1581_s25 = smov [#allocation7]   ;;  %s1879_s9 = smov 4  }
  0x12   : > { %1196 = dma.hbm_to_vmem [thread:$0]  (!%p1673_p6), %s199_s27, 1024, %s201_s7, [#allocation6], %s1577_s14, %s1577_s14, %s1578_s15  }
  0x13   : > { %1202 = dma.hbm_to_vmem [thread:$0]  (!%p1673_p6), %s227_s10, 512, %s229_s13, [#allocation9], %s1579_s16, %s1579_s16, %s1580_s17  }
  0x14   : > { %s214_s26 = sshll.u32 %s1581_s25, 4  ;;  %s240_s27 = sshll.u32 %s1875_s4, 4  ;;  %s215_s26 = int_to_ptr.vmem [resolvable:$true] %s214_s26  ;;  %s241_s27 = int_to_ptr.hbm [resolvable:$true] %s240_s27 }
  0x15   : > { %s1878_s7 = smov 64   ;;  %s1584_s10 = smov [#allocation10]  }
  0x16   : > { %1199 = dma.hbm_to_vmem [thread:$0]  (!%p1673_p6), %s213_s20, 512, %s215_s26, [#allocation6], %s1878_s7, %s1878_s7, %s1879_s9  }
  0x17   : > { %s242_s12 = sshll.u32 %s1584_s10, 4  ;;  %s254_s15 = sshll.u32 %s1876_s5, 4  ;;  %s243_s12 = int_to_ptr.vmem [resolvable:$true] %s242_s12  ;;  %s255_s15 = int_to_ptr.hbm [resolvable:$true] %s254_s15 }
  0x18   : > { %1205 = dma.hbm_to_vmem [thread:$0]  (!%p1673_p6), %s241_s27, 512, %s243_s12, [#allocation9], %s1579_s16, %s1579_s16, %s1580_s17  }
  0x19   : > { %s1585_s18 = smov [#allocation11]   ;;  %s1067_s20 = sadd.s32 4294967294, %s1573_s24  }
  0x1a   : > { %s256_s19 = sshll.u32 %s1585_s18, 4  ;;  %s1701_s25 = sadd.s32 1, %s1573_s24   ;;  %s257_s19 = int_to_ptr.vmem [resolvable:$true] %s256_s19 }
  0x1b   : > { %1208 = dma.hbm_to_vmem [thread:$0]  (!%p1673_p6), %s255_s15, 512, %s257_s19, [#allocation12], %s1579_s16, %s1579_s16, %s1580_s17  }
  0x1c   : > { %s32_s26 = sadd.s32 1, %s1569_s23  ;;  %s29_s30 = ssub.s32 %s1573_s24, %s1701_s25 }
  0x1d   : > { %p39_p7 = scmp.ne.s32.totalorder %s1569_s23, %s1565_s22  ;;  %p30_p8 = scmp.eq.s32.totalorder %s29_s30, 0 }
  0x1e   : > { %p40_p9 = scmp.eq.s32.totalorder %s1573_s24, 0  ;;  %p45_p10 = scmp.ne.s32.totalorder %s1565_s22, %s1561_s21 }
  0x1f   : > { %p174_p11 = scmp.eq.s32.totalorder %s1656_s28, 1  ;;  %p180_p0 = scmp.eq.s32.totalorder %s1067_s20, 1 }
  0x20   : > { %s1713_s8 = scalar_select %p30_p8, %s1569_s23, %s32_s26  }
  0x21   : > { %p1717_p12 = por %p46_p1, %p45_p10  ;;  %p1721_p13 = por %p174_p11, %p39_p7 }
  0x22   : > { %p41_p2 = por %p40_p9, %p39_p7  ;;  %s270_s17 = sand.u32 1, %s1569_s23  }
  0x23   : > { %p1726_p4 = por %p180_p0, %p45_p10  ;;  %p1222_p6 = scmp.lt.s32.totalorder %s1573_s24, 2 }
  0x24   : > { %s1075_s10 = sshll.u32 %s270_s17, 3  ;;  %s1154_s12 = sshll.u32 %s1573_s24, 3 }
  0x25   : > { %s279_s15 = scalar_lea.hbm %s1871_s0, %s1154_s12  ;;  %s274_s19 = scalar_lea.vmem [#allocation2], %s1075_s10 }
  0x26   : > { %s280_s18 = sshll.u32 %s279_s15, 4  ;;  %s282_s26 = sshll.u32 %s274_s19, 4  ;;  %s281_s18 = int_to_ptr.hbm [resolvable:$true] %s280_s18  ;;  %s283_s26 = int_to_ptr.vmem [resolvable:$true] %s282_s26 }
  0x27   : > { %p1735_p8 = pnand %p1222_p6, %p41_p2  ;;  %s271_s30 = scalar_lea.sflag [#allocation3], %s270_s17 }
  0x28   : > { %s1465_s7 = sshra.s32 %s281_s18, 4  ;;  %s1472_s10 = scalar_lea.hbm %s1871_s0, 16  ;;  %s1466_s7 = int_to_ptr.hbm [resolvable:$true] %s1465_s7 }
  0x29   : > { %s1467_s9 = scalar_lea.hbm %s1466_s7, 8  ;;  %p1469_p9 = pneg %p1735_p8 }
  0x2a   : > { %p1468_p7 = scmp.ne.s32.totalorder %s1466_s7, %s1467_s9  ;;  %p1473_p0 = scmp.lt.s32.totalorder %s1466_s7, %s1871_s0 }
  0x2b   : > { %p1474_p2 = scmp.lt.s32.totalorder %s1472_s10, %s1467_s9 }
  0x2c   : > { %p1470_p10 = pnand %p1469_p9, %p1468_p7 }
  0x2d   : > { %p1475_p6 = por %p1474_p2, %p1473_p0 }
  0x2e   : > { %p1471_p11 = pneg %p1470_p10 }
  0x30   : > { %p1476_p5 = pnand %p1475_p6, %p1471_p11 }
  0x32   : > { %1479 = shalt.err (!%p1476_p5)
}
  0x33   : > { %s1886_s17 = smov 4   ;;  %s1887_s19 = smov 64  }
  0x34   : > { %1212 = dma.hbm_to_vmem [thread:$0]  (!%p1735_p8), %s281_s18, 128, %s283_s26, %s271_s30, %s1887_s19, %s1887_s19, %s1886_s17  }
  0x35   : > { %294 = sbr.rel (%p1661_p3) target bundleno = 1405 (0x57d), region = 44  ;;  %s1755_s12 = sand.u32 (!%p1661_p3), 1, %s1565_s22  }
  0x36   : > { %s1079_s7 = sshll.u32 (!%p1661_p3), %s1755_s12, 3  ;;  %s297_s9 = scalar_lea.sflag (!%p1661_p3), [#allocation3], %s1755_s12 }
  0x37   : > { %s1759_s13 = scalar_lea.vmem (!%p1661_p3), [#allocation2], %s1079_s7 }
  0x3a   : > { %1540 = dma.done.wait (%p1717_p12), %s297_s9, 128  }
  0x3b   : > { %1542 = vsyncadd (%p1717_p12), %s297_s9, 4294967168 }
  0x3c   : > { %1544 = dma.done.wait (%p46_p1), [#allocation6], 1536  }
  0x3d   : > { %1546 = vsyncadd (%p46_p1), [#allocation6], 4294965760 }
  0x3e   : > { %1548 = dma.done.wait (%p46_p1), [#allocation9], 1024  }
  0x3f   : > { %1550 = vsyncadd (%p46_p1), [#allocation9], 4294966272 }
  0x40   : > { %1552 = dma.done.wait (%p46_p1), [#allocation12], 512  }
  0x41   : > { %1554 = vsyncadd (%p46_p1), [#allocation12], 4294966784  ;;  %v1116_v0 = vld [vmem:[#allocation5 + $0x30] sm:$0xf]  ;;  %v1163_v1 = vld [vmem:[#allocation5 + $0x34] sm:$0xf0]  ;;  %v465_v29 = vlaneseq }
  0x42   : > { %v1162_v2 = vld [vmem:[#allocation5 + $0x34] sm:$0xf]  ;;  %v1117_v3 = vor.u32 %v1163_v1, %v1116_v0  ;;  %v1118_v4 = vld [vmem:[#allocation5 + $0x38] sm:$0xf0]  ;;  %v1108_v5 = vld [vmem:[#allocation5 + $0x20] sm:$0xf] }
  0x43   : > { %v1161_v6 = vld [vmem:[#allocation5 + $0x24] sm:$0xf0]  ;;  %v1121_v7 = vor.u32 %v1162_v2, %v1118_v4  ;;  %v1160_v8 = vld [vmem:[#allocation5 + $0x24] sm:$0xf]  ;;  %v1110_v9 = vld [vmem:[#allocation5 + $0x28] sm:$0xf0] }
  0x44   : > { %421 = vmatpush.bf16.msra.mxu0 %v1117_v3  ;;  %v1109_v10 = vor.u32 %v1161_v6, %v1108_v5  ;;  %v1113_v11 = vor.u32 %v1160_v8, %v1110_v9  ;;  %v1100_v12 = vld [vmem:[#allocation5 + $0x10] sm:$0xf]  ;;  %v1159_v13 = vld [vmem:[#allocation5 + $0x14] sm:$0xf0]  ;;  %v1158_v14 = vld [vmem:[#allocation5 + $0x14] sm:$0xf] }
  0x45   : > { %435 = vmatpush.bf16.msra.mxu1 %v1121_v7  ;;  %v1102_v15 = vld [vmem:[#allocation5 + $0x18] sm:$0xf0]  ;;  %v1101_v16 = vor.u32 %v1159_v13, %v1100_v12  ;;  %v1092_v18 = vld [vmem:[#allocation5] sm:$0xf]  ;;  %v1157_v19 = vld [vmem:[#allocation5 + $0x4] sm:$0xf0] }
  0x46   : > { %v1105_v17 = vor.u32 %v1158_v14, %v1102_v15  ;;  %v1156_v20 = vld [vmem:[#allocation5 + $0x4] sm:$0xf]  ;;  %v1094_v21 = vld [vmem:[#allocation5 + $0x8] sm:$0xf0]  ;;  %v1093_v22 = vor.u32 %v1157_v19, %v1092_v18  ;;  %v1155_v24 = vld [vmem:[%s1759_s13] sm:$0xff]  ;;  %vm413_vm0 = vcmask 523264  }
  0x47   : > { %v1097_v23 = vor.u32 %v1156_v20, %v1094_v21  ;;  %s1586_s29 = smov 8   ;;  %s1587_s11 = smov 120   ;;  %v1785_v32 = vand.u32 127, %v465_v29  ;;  %v449_v36 = vld [vmem:[#allocation10] sm:$0xff]  ;;  %v450_v37 = vld [vmem:[#allocation10 + $0x8] sm:$0xff]  ;;  %v451_v42 = vld [vmem:[#allocation10 + $0x10] sm:$0xff] }
  0x48   : > { %422 = vmatpush.bf16.msra.mxu0 %v1109_v10  ;;  %v445_v40 = vld [vmem:[#allocation8] sm:$0xff]  ;;  %v446_v41 = vld [vmem:[#allocation8 + $0x8] sm:$0xff]  ;;  %v452_v43 = vld [vmem:[#allocation10 + $0x18] sm:$0xff]  ;;  %s1588_s18 = smov 96   ;;  %s1589_s26 = smov 112   ;;  %vm541_vm3 = vcmask 130048  }
  0x49   : > { %436 = vmatpush.bf16.msra.mxu1 %v1113_v11  ;;  %vm467_vm1 = vcmp.lt.s32.totalorder %v1785_v32, 120  ;;  %v447_v46 = vld [vmem:[#allocation8 + $0x10] sm:$0xff]  ;;  %v448_v47 = vld [vmem:[#allocation8 + $0x18] sm:$0xff]  ;;  %vm480_vm2 = vcmp.lt.s32.totalorder %v1785_v32, 8  ;;  %v453_v54 = vld [vmem:[#allocation11] sm:$0xff]  ;;  %s1590_s20 = smov 80  }
  0x4a   : > { %v454_v55 = vld [vmem:[#allocation11 + $0x8] sm:$0xff]  ;;  %v455_v58 = vld [vmem:[#allocation11 + $0x10] sm:$0xff]  ;;  %v456_v59 = vld [vmem:[#allocation11 + $0x18] sm:$0xff]  ;;  %s1591_s30 = smov 64   ;;  %s1593_s10 = smov 32   ;;  %vm874_vm6 = vcmask 261120  }
  0x4b   : > { %s1594_s14 = smov 16   ;;  %s1595_s15 = smov 48   ;;  %vm877_vm7 = vcmask 392192  }
  0x4c   : > { %423 = vmatpush.bf16.msra.mxu0 %v1101_v16  ;;  %s1085_s17 = sshll.u32 %s1755_s12, 4  ;;  %s1168_s19 = sshll.u32 %s1656_s28, 4 }
  0x4d   : > { %437 = vmatpush.bf16.msra.mxu1 %v1105_v17  ;;  %s354_s7 = scalar_lea.vmem [#allocation13], %s1085_s17 }
  0x50   : > { %424 = vmatpush.bf16.msra.mxu0 %v1093_v22 }
  0x51   : > { %438 = vmatpush.bf16.msra.mxu1 %v1097_v23 }
  0x53   : > { %1122 = vmatmul.msk.bf16.vlgmr.msra.gmra.mxu0 %vm413_vm0, %v1155_v24 }
  0x54   : > { %1123 = vmatmul.msk.bf16.vlgmr.msra.gmra.mxu1 %vm413_vm0, %v1155_v24 }
  0xd0   : > { %v426_v25 = vpop.f32.mrf.mxu0 }
  0xd1   : > { %v440_v26 = vpop.f32.mrf.mxu1  ;;  %472 = vrot.lane.b32.xlu2 %v426_v25, %s1586_s29  ;;  %457 = vrot.lane.b32.xlu0 %v426_v25, %s1587_s11  ;;  %v485_v50 = vmul.f32 %v445_v40, %v426_v25 }
  0xd2   : > { %461 = vrot.lane.b32.xlu1 %v440_v26, %s1587_s11  ;;  %v486_v51 = vmul.f32 %v446_v41, %v440_v26 }
  0xd8   : > { %v428_v27 = vpop.f32.mrf.mxu0 }
  0xd9   : > { %v442_v28 = vpop.f32.mrf.mxu1  ;;  %474 = vrot.lane.b32.xlu2 %v428_v27, %s1586_s29  ;;  %459 = vrot.lane.b32.xlu0 %v428_v27, %s1587_s11  ;;  %v487_v56 = vmul.f32 %v447_v46, %v428_v27 }
  0xda   : > { %463 = vrot.lane.b32.xlu1 %v442_v28, %s1587_s11  ;;  %v488_v57 = vmul.f32 %v448_v47, %v442_v28  ;;  %s942_s11 = scalar_lea.hbm %s1877_s6, %s1168_s19 }
  0xe1   : > { %476 = vrot.lane.b32.xlu0 %v440_v26, %s1586_s29 }
  0xe2   : > { %478 = vrot.lane.b32.xlu1 %v442_v28, %s1586_s29 }
 0x12b   : > { %v473_v33 = vpop.permute.xlu2 %472 }
 0x133   : > { %v475_v61 = vpop.permute.xlu2 %474 }
 0x143   : > { %v458_v30 = vpop.permute.xlu0 %457 }
 0x144   : > { %v462_v31 = vpop.permute.xlu1 %461 }
 0x145   : > { %v468_v38 = vsel %vm467_vm1, %v458_v30, %v462_v31  ;;  %v470_v39 = vsel %vm467_vm1, %v462_v31, %v458_v30 }
 0x146   : > { %v489_v48 = vmul.f32 %v468_v38, %v449_v36  ;;  %v490_v49 = vmul.f32 %v470_v39, %v450_v37 }
 0x148   : > { %v493_v62 = vadd.f32 %v489_v48, %v485_v50  ;;  %v494_v63 = vadd.f32 %v490_v49, %v486_v51 }
 0x14b   : > { %v460_v34 = vpop.permute.xlu0 %459 }
 0x14c   : > { %v464_v35 = vpop.permute.xlu1 %463 }
 0x14d   : > { %v469_v44 = vsel %vm467_vm1, %v460_v34, %v464_v35  ;;  %v471_v45 = vsel %vm467_vm1, %v464_v35, %v460_v34 }
 0x14e   : > { %v491_v52 = vmul.f32 %v469_v44, %v451_v42  ;;  %v492_v53 = vmul.f32 %v471_v45, %v452_v43 }
 0x150   : > { %v495_v7 = vadd.f32 %v491_v52, %v487_v56  ;;  %v496_v8 = vadd.f32 %v492_v53, %v488_v57 }
 0x153   : > { %v477_v60 = vpop.permute.xlu0 %476 }
 0x154   : > { %v479_v0 = vpop.permute.xlu1 %478  ;;  %v481_v1 = vsel %vm480_vm2, %v473_v33, %v477_v60  ;;  %v483_v2 = vsel %vm480_vm2, %v477_v60, %v473_v33 }
 0x155   : > { %v482_v3 = vsel %vm480_vm2, %v475_v61, %v479_v0  ;;  %v484_v4 = vsel %vm480_vm2, %v479_v0, %v475_v61  ;;  %v497_v5 = vmul.f32 %v483_v2, %v453_v54  ;;  %v498_v6 = vmul.f32 %v481_v1, %v454_v55 }
 0x156   : > { %v499_v9 = vmul.f32 %v484_v4, %v455_v58  ;;  %v500_v10 = vmul.f32 %v482_v3, %v456_v59  ;;  %v530_v3 = vshrl.u32 %v465_v29, 7  ;;  %v1592_v4 = vmov 0.0  }
 0x157   : > { %v501_v11 = vadd.f32 %v497_v5, %v493_v62  ;;  %v502_v12 = vadd.f32 %v498_v6, %v494_v63 }
 0x158   : > { %v503_v13 = vadd.f32 %v499_v9, %v495_v7  ;;  %v504_v14 = vadd.f32 %v500_v10, %v496_v8  ;;  %vm532_vm4 = vcmp.gt.s32.totalorder %v1785_v32, %v530_v3  ;;  %v531_v7 = vadd.s32 8, %v530_v3 }
 0x159   : > { %v505_v15 = vpack.c.bf16 %v502_v12, %v501_v11  ;;  %v534_v5 = vsel %vm532_vm4, -1e+30, %v1592_v4 }
 0x15a   : > { %v506_v16 = vpack.c.bf16 %v504_v14, %v503_v13  ;;  %vm533_vm5 = vcmp.gt.s32.totalorder %v1785_v32, %v531_v7 }
 0x15b   : > { %513 = vrot.lane.b32.xlu1 %v505_v15, %s1588_s18  ;;  %509 = vrot.lane.b32.xlu2 %v505_v15, %s1589_s26  ;;  %v521_v17 = vrot.slane %v505_v15, 4  ;;  %v536_v22 = vunpack.c.l.b16 %v505_v15  ;;  %v535_v12 = vsel %vm533_vm5, -1e+30, %v1592_v4 }
 0x15c   : > { %511 = vrot.lane.b32.xlu0 %v506_v16, %s1589_s26  ;;  %v522_v18 = vrot.slane %v506_v16, 4  ;;  %v537_v23 = vunpack.c.l.b16 %v506_v16  ;;  %s945_s26 = sshll.u32 %s942_s11, 4  ;;  %s946_s26 = int_to_ptr.hbm [resolvable:$true] %s945_s26 }
 0x15d   : > { %v738_v19 = vunpack.c.l.b16 %v521_v17 }
 0x15e   : > { %v739_v20 = vunpack.c.l.b16 %v522_v18  ;;  %v538_v24 = vpack.c.b16 %v537_v23, %v536_v22 }
 0x160   : > { %v740_v21 = vpack.c.b16 %v739_v20, %v738_v19 }
 0x162   : > { %752 = vmatpush.bf16.msrb.mxu0 %v740_v21 }
 0x163   : > { %519 = vrot.lane.b32.xlu1 %v506_v16, %s1590_s20  ;;  %515 = vrot.lane.b32.xlu2 %v506_v16, %s1588_s18  ;;  %s943_s18 = sshll.u32 %s354_s7, 4  ;;  %s944_s18 = int_to_ptr.vmem [resolvable:$true] %s943_s18 }
 0x164   : > { %517 = vrot.lane.b32.xlu0 %v505_v15, %s1590_s20  ;;  %s931_s20 = scalar_lea.sflag [#allocation4], %s1755_s12 }
 0x16b   : > { %539 = vrot.lane.b32.xlu2 %v538_v24, %s1591_s30 }
 0x1b5   : > { %v510_v25 = vpop.permute.xlu2 %509 }
 0x1b6   : > { %v523_v31 = vrot.slane %v510_v25, 4  ;;  %v562_v38 = vunpack.c.l.b16 %v510_v25 }
 0x1b8   : > { %v764_v44 = vunpack.c.l.b16 %v523_v31 }
 0x1bd   : > { %v516_v26 = vpop.permute.xlu2 %515 }
 0x1be   : > { %v526_v30 = vrot.slane %v516_v26, 4  ;;  %v588_v34 = vunpack.c.l.b16 %v516_v26 }
 0x1c0   : > { %v791_v41 = vunpack.c.l.b16 %v526_v30 }
 0x1c5   : > { %v540_v27 = vpop.permute.xlu2 %539 }
 0x1c6   : > { %v546_v28 = vsel %vm541_vm3, %v540_v27, 0 }
 0x1c7   : > { %555 = vmatpush.bf16.xpose.msra.mxu2 %v546_v28 }
 0x1cd   : > { %v514_v33 = vpop.permute.xlu1 %513 }
 0x1ce   : > { %v525_v35 = vrot.slane %v514_v33, 4  ;;  %v587_v36 = vunpack.c.l.b16 %v514_v33  ;;  %v512_v37 = vpop.permute.xlu0 %511  ;;  %1124 = vmatmul.msk.bf16.vlgmr.msra.gmra.mxu2 %vm541_vm3, %v538_v24 }
 0x1cf   : > { %v524_v39 = vrot.slane %v512_v37, 4  ;;  %v563_v40 = vunpack.c.l.b16 %v512_v37 }
 0x1d0   : > { %v589_v42 = vpack.c.b16 %v588_v34, %v587_v36  ;;  %v790_v43 = vunpack.c.l.b16 %v525_v35 }
 0x1d1   : > { %v564_v45 = vpack.c.b16 %v563_v40, %v562_v38  ;;  %v765_v46 = vunpack.c.l.b16 %v524_v39 }
 0x1d2   : > { %v792_v47 = vpack.c.b16 %v791_v41, %v790_v43  ;;  %590 = vrot.lane.b32.xlu1 %v589_v42, %s1591_s30 }
 0x1d3   : > { %565 = vrot.lane.b32.xlu0 %v564_v45, %s1591_s30  ;;  %v766_v48 = vpack.c.b16 %v765_v46, %v764_v44 }
 0x1d5   : > { %778 = vmatpush.bf16.msrb.mxu1 %v766_v48  ;;  %v520_v49 = vpop.permute.xlu1 %519 }
 0x1d6   : > { %v613_v50 = vunpack.c.l.b16 %v520_v49  ;;  %v518_v51 = vpop.permute.xlu0 %517  ;;  %v528_v56 = vrot.slane %v520_v49, 4 }
 0x1d7   : > { %v612_v52 = vunpack.c.l.b16 %v518_v51  ;;  %v527_v57 = vrot.slane %v518_v51, 4 }
 0x1d8   : > { %v817_v62 = vunpack.c.l.b16 %v528_v56 }
 0x1d9   : > { %v614_v53 = vpack.c.b16 %v613_v50, %v612_v52  ;;  %v816_v63 = vunpack.c.l.b16 %v527_v57 }
 0x1db   : > { %615 = vrot.lane.b32.xlu2 %v614_v53, %s1591_s30  ;;  %v818_v0 = vpack.c.b16 %v817_v62, %v816_v63  ;;  %s1509_s30 = sshra.s32 %s946_s26, 4  ;;  %s1510_s30 = int_to_ptr.hbm [resolvable:$true] %s1509_s30 }
 0x1dc   : > { %s1511_s28 = scalar_lea.hbm %s1510_s30, 16  ;;  %p1516_p12 = scmp.lt.s32.totalorder %s1510_s30, %s1877_s6 }
 0x1dd   : > { %p1512_p1 = scmp.ne.s32.totalorder %s1510_s30, %s1511_s28 }
 0x1df   : > { %p1513_p3 = pnand %p1512_p1, %p1721_p13 }
 0x1e1   : > { %p1514_p5 = pneg %p1513_p3 }
 0x235   : > { %v616_v54 = vpop.permute.xlu2 %615 }
 0x236   : > { %v621_v61 = vsel %vm541_vm3, %v616_v54, 0 }
 0x244   : > { %v591_v55 = vpop.permute.xlu1 %590 }
 0x245   : > { %v566_v58 = vpop.permute.xlu0 %565  ;;  %v596_v59 = vsel %vm541_vm3, %v591_v55, 0 }
 0x246   : > { %v571_v60 = vsel %vm541_vm3, %v566_v58, 0  ;;  %605 = vmatpush.bf16.xpose.msrb.mxu2 %v596_v59 }
 0x247   : > { %580 = vmatpush.bf16.xpose.msra.mxu3 %v571_v60 }
 0x24d   : > { %1126 = vmatmul.msk.bf16.vlgmr.msrb.gmra.mxu2 %vm541_vm3, %v589_v42 }
 0x24e   : > { %804 = vmatpush.bf16.msra.mxu2 %v792_v47  ;;  %1125 = vmatmul.msk.bf16.vlgmr.msra.gmra.mxu3 %vm541_vm3, %v564_v45 }
 0x24f   : > { %630 = vmatpush.bf16.xpose.msrb.mxu3 %v621_v61 }
 0x251   : > { %v557_v1 = vpop.f32.mrf.mxu2 }
 0x252   : > { %v558_v26 = vadd.f32 %v557_v1, %v534_v5 }
 0x254   : > { %v637_v27 = vsel %vm541_vm3, %v558_v26, -inf }
 0x257   : > { %830 = vmatpush.bf16.msra.mxu3 %v818_v0 }
 0x259   : > { %v559_v2 = vpop.f32.mrf.mxu2 }
 0x25a   : > { %v560_v17 = vadd.f32 %v559_v2, %v535_v12 }
 0x25c   : > { %v640_v22 = vsel %vm541_vm3, %v560_v17, -inf }
 0x25e   : > { %1127 = vmatmul.msk.bf16.vlgmr.msrb.gmra.mxu3 %vm541_vm3, %v614_v53 }
 0x2d0   : > { %v607_v6 = vpop.f32.mrf.mxu2 }
 0x2d1   : > { %v582_v8 = vpop.f32.mrf.mxu3  ;;  %v608_v9 = vadd.f32 %v607_v6, %v534_v5 }
 0x2d2   : > { %v583_v11 = vadd.f32 %v582_v8, %v534_v5 }
 0x2d3   : > { %v649_v10 = vsel %vm541_vm3, %v608_v9, -inf }
 0x2d4   : > { %650 = vmax.xlane.f32.xlu0 %v649_v10  ;;  %v643_v16 = vsel %vm541_vm3, %v583_v11, -inf }
 0x2d8   : > { %v609_v13 = vpop.f32.mrf.mxu2 }
 0x2d9   : > { %v584_v14 = vpop.f32.mrf.mxu3  ;;  %v610_v15 = vadd.f32 %v609_v13, %v535_v12 }
 0x2da   : > { %v585_v18 = vadd.f32 %v584_v14, %v535_v12 }
 0x2db   : > { %v652_v29 = vsel %vm541_vm3, %v610_v15, -inf }
 0x2dc   : > { %653 = vmax.xlane.f32.xlu1 %v652_v29  ;;  %644 = vmax.xlane.f32.xlu0 %v643_v16  ;;  %v646_v21 = vsel %vm541_vm3, %v585_v18, -inf }
 0x2e1   : > { %v632_v19 = vpop.f32.mrf.mxu3 }
 0x2e2   : > { %v633_v20 = vadd.f32 %v632_v19, %v534_v5 }
 0x2e4   : > { %647 = vmax.xlane.f32.xlu1 %v646_v21  ;;  %641 = vmax.xlane.f32.xlu0 %v640_v22  ;;  %v655_v32 = vsel %vm541_vm3, %v633_v20, -inf }
 0x2e5   : > { %656 = vmax.xlane.f32.xlu2 %v655_v32 }
 0x2e9   : > { %v634_v23 = vpop.f32.mrf.mxu3 }
 0x2ea   : > { %v635_v24 = vadd.f32 %v634_v23, %v535_v12 }
 0x2ec   : > { %v658_v25 = vsel %vm541_vm3, %v635_v24, -inf }
 0x2ed   : > { %659 = vmax.xlane.f32.xlu2 %v658_v25 }
 0x2f5   : > { %638 = vmax.xlane.f32.xlu2 %v637_v27 }
 0x347   : > { %v651_v28 = vpop.xlane.xlu0 %650 }
 0x348   : > { %v665_v30 = vsub.f32 %v608_v9, %v651_v28 }
 0x34a   : > { %v677_v31 = vmul.f32 1.442695, %v665_v30 }
 0x34c   : > { %1283 = vpow2.f32 %v677_v31 }
 0x34f   : > { %v654_v33 = vpop.xlane.xlu1 %653  ;;  %v645_v34 = vpop.xlane.xlu0 %644 }
 0x350   : > { %v666_v35 = vsub.f32 %v610_v15, %v654_v33  ;;  %v663_v38 = vsub.f32 %v583_v11, %v645_v34 }
 0x352   : > { %v1284_v36 = vpop.eup %1283  ;;  %v679_v37 = vmul.f32 1.442695, %v666_v35  ;;  %v673_v40 = vmul.f32 1.442695, %v663_v38 }
 0x353   : > { %v697_v39 = vsel %vm541_vm3, %v1284_v36, 0.0 }
 0x354   : > { %1285 = vpow2.f32 %v679_v37  ;;  %698 = vadd.xlane.f32.xlu1 %v697_v39 }
 0x355   : > { %1287 = vpow2.f32 %v673_v40 }
 0x357   : > { %v642_v41 = vpop.xlane.xlu0 %641  ;;  %v648_v43 = vpop.xlane.xlu1 %647 }
 0x358   : > { %v657_v42 = vpop.xlane.xlu2 %656  ;;  %v662_v46 = vsub.f32 %v560_v17, %v642_v41  ;;  %v664_v49 = vsub.f32 %v585_v18, %v648_v43 }
 0x359   : > { %v667_v44 = vsub.f32 %v633_v20, %v657_v42 }
 0x35a   : > { %v1286_v45 = vpop.eup %1285  ;;  %v671_v50 = vmul.f32 1.442695, %v662_v46  ;;  %v675_v52 = vmul.f32 1.442695, %v664_v49 }
 0x35b   : > { %v681_v47 = vmul.f32 1.442695, %v667_v44  ;;  %v700_v48 = vsel %vm541_vm3, %v1286_v45, 0.0  ;;  %v1288_v51 = vpop.eup %1287 }
 0x35c   : > { %701 = vadd.xlane.f32.xlu2 %v700_v48  ;;  %v691_v56 = vsel %vm541_vm3, %v1288_v51, 0.0 }
 0x35d   : > { %1289 = vpow2.f32 %v681_v47 }
 0x35e   : > { %1291 = vpow2.f32 %v671_v50 }
 0x35f   : > { %1293 = vpow2.f32 %v675_v52 }
 0x360   : > { %v660_v53 = vpop.xlane.xlu2 %659 }
 0x361   : > { %v668_v54 = vsub.f32 %v635_v24, %v660_v53 }
 0x363   : > { %v683_v55 = vmul.f32 1.442695, %v668_v54  ;;  %v1290_v57 = vpop.eup %1289 }
 0x364   : > { %692 = vadd.xlane.f32.xlu2 %v691_v56  ;;  %v703_v58 = vsel %vm541_vm3, %v1290_v57, 0.0  ;;  %v1292_v59 = vpop.eup %1291 }
 0x365   : > { %1295 = vpow2.f32 %v683_v55  ;;  %704 = vadd.xlane.f32.xlu0 %v703_v58  ;;  %v1294_v62 = vpop.eup %1293  ;;  %v688_v1 = vsel %vm541_vm3, %v1292_v59, 0.0 }
 0x366   : > { %v694_v3 = vsel %vm541_vm3, %v1294_v62, 0.0 }
 0x368   : > { %v639_v60 = vpop.xlane.xlu2 %638 }
 0x369   : > { %v661_v61 = vsub.f32 %v558_v26, %v639_v60 }
 0x36b   : > { %v1296_v63 = vpop.eup %1295  ;;  %v669_v0 = vmul.f32 1.442695, %v661_v61 }
 0x36c   : > { %689 = vadd.xlane.f32.xlu2 %v688_v1  ;;  %v706_v2 = vsel %vm541_vm3, %v1296_v63, 0.0 }
 0x36d   : > { %1297 = vpow2.f32 %v669_v0  ;;  %707 = vadd.xlane.f32.xlu1 %v706_v2  ;;  %695 = vadd.xlane.f32.xlu0 %v694_v3 }
 0x373   : > { %v1298_v4 = vpop.eup %1297 }
 0x374   : > { %v685_v5 = vsel %vm541_vm3, %v1298_v4, 0.0 }
 0x375   : > { %686 = vadd.xlane.f32.xlu1 %v685_v5 }
 0x3c7   : > { %v699_v6 = vpop.xlane.xlu1 %698 }
 0x3c8   : > { %1299 = vrcp.f32 %v699_v6 }
 0x3ce   : > { %v1300_v8 = vpop.eup %1299 }
 0x3cf   : > { %v702_v7 = vpop.xlane.xlu2 %701  ;;  %v721_v9 = vmul.f32 %v1300_v8, %v1284_v36  ;;  %v1166_v8 = vld [vmem:[#allocation7 + $0x10] sm:$0xff] }
 0x3d0   : > { %1301 = vrcp.f32 %v702_v7  ;;  %v1167_v7 = vld [vmem:[#allocation7 + $0x18] sm:$0xff] }
 0x3d1   : > { %v729_v11 = vpack.c.bf16 %v721_v9, %v721_v9  ;;  %918 = vmatpush.bf16.msra.mxu0 %v1167_v7  ;;  %v1165_v9 = vld [vmem:[#allocation7 + $0x8] sm:$0xff] }
 0x3d3   : > { %v787_v29 = vunpack.c.l.b16 %v729_v11 }
 0x3d5   : > { %919 = vmatpush.bf16.msra.mxu0 %v1166_v8 }
 0x3d6   : > { %v1302_v10 = vpop.eup %1301 }
 0x3d7   : > { %v722_v12 = vmul.f32 %v1302_v10, %v1286_v45  ;;  %v693_v13 = vpop.xlane.xlu2 %692  ;;  %v1164_v10 = vld [vmem:[#allocation7] sm:$0xff] }
 0x3d8   : > { %v705_v15 = vpop.xlane.xlu0 %704 }
 0x3d9   : > { %v730_v14 = vpack.c.bf16 %v722_v12, %v722_v12  ;;  %1303 = vrcp.f32 %v705_v15  ;;  %920 = vmatpush.bf16.msra.mxu0 %v1165_v9 }
 0x3da   : > { %1305 = vrcp.f32 %v693_v13 }
 0x3db   : > { %v788_v16 = vunpack.c.l.b16 %v730_v14 }
 0x3dd   : > { %v789_v17 = vpack.c.b16 %v788_v16, %v787_v29  ;;  %921 = vmatpush.bf16.msra.mxu0 %v1164_v10 }
 0x3df   : > { %1130 = vmatmul.msk.bf16.vlgmr.msra.gmra.mxu2 %vm541_vm3, %v789_v17  ;;  %v690_v19 = vpop.xlane.xlu2 %689  ;;  %v1304_v20 = vpop.eup %1303 }
 0x3e0   : > { %v708_v18 = vpop.xlane.xlu1 %707  ;;  %v696_v21 = vpop.xlane.xlu0 %695  ;;  %v723_v32 = vmul.f32 %v1304_v20, %v1290_v57 }
 0x3e1   : > { %1307 = vrcp.f32 %v708_v18  ;;  %v1306_v22 = vpop.eup %1305 }
 0x3e2   : > { %1309 = vrcp.f32 %v696_v21  ;;  %v719_v23 = vmul.f32 %v1306_v22, %v1288_v51  ;;  %v731_v26 = vpack.c.bf16 %v723_v32, %v723_v32 }
 0x3e3   : > { %1311 = vrcp.f32 %v690_v19 }
 0x3e4   : > { %v727_v31 = vpack.c.bf16 %v719_v23, %v719_v23  ;;  %v813_v36 = vunpack.c.l.b16 %v731_v26 }
 0x3e6   : > { %v761_v39 = vunpack.c.l.b16 %v727_v31 }
 0x3e7   : > { %v1308_v24 = vpop.eup %1307 }
 0x3e8   : > { %v1310_v25 = vpop.eup %1309  ;;  %v724_v27 = vmul.f32 %v1308_v24, %v1296_v63  ;;  %v687_v28 = vpop.xlane.xlu1 %686 }
 0x3e9   : > { %v1312_v30 = vpop.eup %1311  ;;  %v720_v33 = vmul.f32 %v1310_v25, %v1294_v62  ;;  %1313 = vrcp.f32 %v687_v28 }
 0x3ea   : > { %v732_v34 = vpack.c.bf16 %v724_v27, %v724_v27  ;;  %v718_v38 = vmul.f32 %v1312_v30, %v1292_v59 }
 0x3eb   : > { %v728_v35 = vpack.c.bf16 %v720_v33, %v720_v33 }
 0x3ec   : > { %v814_v37 = vunpack.c.l.b16 %v732_v34  ;;  %v726_v44 = vpack.c.bf16 %v718_v38, %v718_v38 }
 0x3ed   : > { %v762_v40 = vunpack.c.l.b16 %v728_v35 }
 0x3ee   : > { %v815_v41 = vpack.c.b16 %v814_v37, %v813_v36  ;;  %v736_v47 = vunpack.c.l.b16 %v726_v44 }
 0x3ef   : > { %v1314_v42 = vpop.eup %1313  ;;  %v763_v43 = vpack.c.b16 %v762_v40, %v761_v39 }
 0x3f0   : > { %v717_v45 = vmul.f32 %v1314_v42, %v1298_v4  ;;  %1131 = vmatmul.msk.bf16.vlgmr.msra.gmra.mxu3 %vm541_vm3, %v815_v41 }
 0x3f1   : > { %1129 = vmatmul.msk.bf16.vlgmr.msrb.gmra.mxu1 %vm541_vm3, %v763_v43 }
 0x3f2   : > { %v725_v46 = vpack.c.bf16 %v717_v45, %v717_v45 }
 0x3f4   : > { %v735_v48 = vunpack.c.l.b16 %v725_v46 }
 0x3f6   : > { %v737_v49 = vpack.c.b16 %v736_v47, %v735_v48 }
 0x3f8   : > { %1128 = vmatmul.msk.bf16.vlgmr.msrb.gmra.mxu0 %vm541_vm3, %v737_v49 }
 0x462   : > { %v806_v50 = vpop.f32.mrf.mxu2 }
 0x463   : > { %v841_v51 = vpack.c.bf16 %v806_v50, %v806_v50 }
 0x465   : > { %v859_v54 = vunpack.c.l.b16 %v841_v51 }
 0x46a   : > { %v808_v52 = vpop.f32.mrf.mxu2 }
 0x46b   : > { %v842_v53 = vpack.c.bf16 %v808_v52, %v808_v52 }
 0x46d   : > { %v860_v55 = vunpack.c.l.b16 %v842_v53 }
 0x46e   : > { %v780_v56 = vpop.f32.mrf.mxu1 }
 0x46f   : > { %v861_v57 = vpack.c.b16 %v860_v55, %v859_v54  ;;  %v839_v59 = vpack.c.bf16 %v780_v56, %v780_v56 }
 0x471   : > { %862 = vrot.lane.b32.xlu1 %v861_v57, %s1593_s10  ;;  %v852_v62 = vunpack.c.l.b16 %v839_v59 }
 0x473   : > { %v832_v58 = vpop.f32.mrf.mxu3 }
 0x474   : > { %v843_v0 = vpack.c.bf16 %v832_v58, %v832_v58 }
 0x475   : > { %v754_v11 = vpop.f32.mrf.mxu0 }
 0x476   : > { %v782_v60 = vpop.f32.mrf.mxu1  ;;  %v866_v4 = vunpack.c.l.b16 %v843_v0  ;;  %v837_v14 = vpack.c.bf16 %v754_v11, %v754_v11 }
 0x477   : > { %v840_v61 = vpack.c.bf16 %v782_v60, %v782_v60 }
 0x478   : > { %v847_v29 = vunpack.c.l.b16 %v837_v14 }
 0x479   : > { %v853_v63 = vunpack.c.l.b16 %v840_v61 }
 0x47b   : > { %v854_v1 = vpack.c.b16 %v853_v63, %v852_v62  ;;  %v834_v2 = vpop.f32.mrf.mxu3 }
 0x47c   : > { %v844_v3 = vpack.c.bf16 %v834_v2, %v834_v2 }
 0x47d   : > { %855 = vrot.lane.b32.xlu0 %v854_v1, %s1594_s14  ;;  %v756_v12 = vpop.f32.mrf.mxu0 }
 0x47e   : > { %v867_v5 = vunpack.c.l.b16 %v844_v3  ;;  %v838_v13 = vpack.c.bf16 %v756_v12, %v756_v12 }
 0x480   : > { %v868_v6 = vpack.c.b16 %v867_v5, %v866_v4  ;;  %v848_v15 = vunpack.c.l.b16 %v838_v13 }
 0x482   : > { %869 = vrot.lane.b32.xlu2 %v868_v6, %s1595_s15  ;;  %v849_v16 = vpack.c.b16 %v848_v15, %v847_v29  ;;  %s1515_s15 = scalar_lea.hbm %s1877_s6, 32 }
 0x483   : > { %p1517_p8 = scmp.lt.s32.totalorder %s1515_s15, %s1511_s28 }
 0x485   : > { %p1518_p7 = por %p1517_p8, %p1516_p12 }
 0x487   : > { %p1519_p9 = pnand %p1518_p7, %p1514_p5 }
 0x4dc   : > { %v870_v20 = vpop.permute.xlu2 %869 }
 0x4e3   : > { %v863_v18 = vpop.permute.xlu1 %862 }
 0x4ef   : > { %v856_v17 = vpop.permute.xlu0 %855 }
 0x4f0   : > { %v873_v19 = vsel %vm541_vm3, %v849_v16, %v856_v17 }
 0x4f1   : > { %v876_v21 = vsel %vm874_vm6, %v873_v19, %v863_v18 }
 0x4f2   : > { %v879_v22 = vsel %vm877_vm7, %v876_v21, %v870_v20 }
 0x4f3   : > { %1148 = vmatmul.msk.bf16.vlgmr.msra.gmra.mxu0 %vm413_vm0, %v879_v22 }
 0x570   : > { %v923_v32 = vpop.f32.mrf.mxu0 }
 0x571   : > { %928 = vst.msk [vmem:[%s354_s7] sm:$0xff] %vm413_vm0, %v923_v32 }
 0x578   : > { %v925_v23 = vpop.f32.mrf.mxu0 }
 0x579   : > { %929 = vst.msk [vmem:[%s354_s7 + $0x8] sm:$0xff] %vm413_vm0, %v925_v23 }
 0x57a   : > { %1522 = shalt.err (!%p1519_p9)
}
 0x57b   : > { %s1596_s12 = smov 128  }
 0x57c   : > { %1191 = dma.vmem_to_hbm [thread:$0]  (%p1721_p13), %s944_s18, 256, %s946_s26, %s931_s20, %s1596_s12, %s1596_s12, %s1586_s29  }
 0x57d PF: > { %s960_s7 = sand.u32 1, %s1561_s21   ;;  %p1888_p10 = scmp.ge.s32.totalorder %s1573_s24, 2 }
 0x57e   : > { %s961_s9 = scalar_lea.sflag [#allocation4], %s960_s7 }
 0x57f   : > { %p1214_p11 = pnand %p1888_p10, %p1726_p4 }
 0x581   : > { %p1215_p0 = pneg %p1214_p11 }
 0x583   : > { %1556 = dma.done.wait (%p1215_p0), %s961_s9, 256  }
 0x584   : > { %1558 = vsyncadd (%p1215_p0), %s961_s9, 4294967040  ;;  %p22_p2 = scmp.ge.s32.totalorder %s1701_s25, 4   ;;  %s1889_s21 = smov %s1565_s22 }
 0x585   : > { %s1890_s22 = smov %s1569_s23  ;;  %s1891_s23 = smov %s1713_s8 }
 0x586   : > { %s1892_s24 = smov %s1701_s25  ;;  %24 = sbr.rel (!%p22_p2) target bundleno = 8 (0x8), region = 109 }
 0x58b   :  { %967 = vsyncpa [#allocation3], 1 }
 0x58c   :  { %969 = vsyncpa [#allocation3 + $0x1], 1 }
 0x58d   :  { %970 = vsyncpa [#allocation6], 1 }
 0x58e   :  { %971 = vsyncpa [#allocation9], 1 }
 0x58f   :  { %972 = vsyncpa [#allocation12], 1 }
 0x590   :  { %973 = vsyncpa [#allocation4], 1 }
 0x591   :  { %975 = vsyncpa [#allocation4 + $0x1], 1 }

</bundles_post_ra>
